<compile_context>
chip_gen: v6e
topology: v6e:2x2x1
jax: 0.10.0
libtpu: 0.0.40
codegen_flags: <defaults>
</compile_context>

<pallas_src>
import jax
import jax.numpy as jnp
from jax.experimental import pallas as pl
from jax.experimental.pallas import tpu as pltpu

TRIM_H = 128
TRIM_W = 128


def _round_up(v: int, m: int) -> int:
    return (v + m - 1) // m * m


def _trim_kernel(x_ref, o_ref):
    # x_ref block: (blk, th, read_w); o_ref block: (blk, th, tw).
    # When read_w == tw this is a plain copy; otherwise the static slice
    # realizes the width trim on the VMEM tile (the wider read keeps the
    # HBM -> VMEM DMA fully contiguous per row-plane).
    o_ref[...] = x_ref[:, : o_ref.shape[-2], : o_ref.shape[-1]]


def trim(x: jax.Array, *, per_step_bytes: int = 8 << 20) -> jax.Array:
    """Pallas equivalent of x[:, :, :128, :128] (clips like PyTorch if H/W < 128)."""
    n, c, h, w = x.shape
    th = min(h, TRIM_H)
    tw = min(w, TRIM_W)

    # Identity case: slicing changes nothing; skip the kernel entirely.
    if th == h and tw == w:
        return x

    itemsize = jnp.dtype(x.dtype).itemsize

    # Full-width-read heuristic (segment-size aware): reading full rows gives
    # one contiguous slab per plane instead of `th` short strided segments.
    # Only worth it when the trimmed segment is short (< 512 B) or the extra
    # bytes are negligible (<= 10%); otherwise the wasted read bandwidth loses.
    extra_ratio = (w - tw) / tw
    seg_bytes = tw * itemsize
    if w > tw and (extra_ratio <= 0.10 or (seg_bytes < 512 and extra_ratio <= 0.5)):
        read_w = w
    else:
        read_w = tw

    # Flatten (n, c) -> (nc,) so block size is not capped by C.
    nc = n * c
    x_flat = x.reshape(nc, h, w)

    # Block size: largest leading-axis block whose VMEM-padded in+out footprint
    # stays under per_step_bytes, clamped so the grid keeps >= ~4 points
    # (megacore sharding + pipeline overlap).
    in_plane_bytes = _round_up(th, 8) * _round_up(read_w, 128) * itemsize
    out_plane_bytes = _round_up(th, 8) * _round_up(tw, 128) * itemsize
    per_plane_bytes = in_plane_bytes + out_plane_bytes
    blk_budget = max(1, min(nc, per_step_bytes // per_plane_bytes))
    target_points = min(nc, 4)
    blk = max(1, min(blk_budget, pl.cdiv(nc, target_points)))

    grid = (pl.cdiv(nc, blk),)

    in_spec = pl.BlockSpec(
        (blk, th, read_w),
        # Always take spatial block (0, 0): elements [:, :th, :read_w].
        lambda i: (i, 0, 0),
    )
    out_spec = pl.BlockSpec(
        (blk, th, tw),
        lambda i: (i, 0, 0),
    )

    # Double-buffered in+out blocks plus headroom; explicit because v5e's
    # default scoped-VMEM limit is only 16 MiB. Capped relative to the chip's
    # VMEM capacity (v7x has only 64 MiB per TensorCore).
    step_bytes = blk * per_plane_bytes
    vmem_limit = int(max(16 << 20, min(3 * step_bytes, 40 << 20)))
    try:
        cap = int(getattr(pltpu.get_tpu_info(), "vmem_capacity_bytes", 64 << 20))
        vmem_limit = int(min(vmem_limit, max(16 << 20, cap // 2)))
    except Exception:
        vmem_limit = int(min(vmem_limit, 32 << 20))

    out_flat = pl.pallas_call(
        _trim_kernel,
        out_shape=jax.ShapeDtypeStruct((nc, th, tw), x.dtype),
        grid_spec=pltpu.PrefetchScalarGridSpec(
            num_scalar_prefetch=0,
            grid=grid,
            in_specs=[in_spec],
            out_specs=out_spec,
        ),
        compiler_params=pltpu.CompilerParams(
            dimension_semantics=("parallel",),
            vmem_limit_bytes=vmem_limit,
        ),
    )(x_flat)

    return out_flat.reshape(n, c, th, tw)


if __name__ == "__main__":
    key = jax.random.PRNGKey(0)
    k1, k2, k3 = jax.random.split(key, 3)

    # Case 1: f32, spatial dims > 128 -> real trim; trimmed strided-read path
    # (512 B segments), flattened grid of 3 points (nc=6, blk=2).
    x1 = jax.random.normal(k1, (2, 3, 160, 144), dtype=jnp.float32)
    y1 = jax.block_until_ready(trim(x1))
    ref1 = x1[:, :, :TRIM_H, :TRIM_W]
    assert y1.shape == ref1.shape and y1.dtype == x1.dtype
    assert jnp.array_equal(y1, ref1)

    # Case 2: small spatial dims -> PyTorch-style clipped slice == identity
    # (early-return path, no kernel launch / no copy).
    x2 = jax.random.normal(k2, (2, 4, 16, 16), dtype=jnp.float32)
    y2 = jax.block_until_ready(trim(x2))
    ref2 = x2[:, :, :TRIM_H, :TRIM_W]
    assert y2.shape == ref2.shape
    assert jnp.array_equal(y2, ref2)

    # Case 3: bf16 with short trimmed segments (256 B) -> full-width contiguous
    # read path; nc=10 with blk=3 exercises a partial last block.
    x3 = jax.random.normal(k3, (2, 5, 144, 160), dtype=jnp.bfloat16)
    y3 = jax.block_until_ready(trim(x3))
    ref3 = x3[:, :, :TRIM_H, :TRIM_W]
    assert y3.shape == ref3.shape and y3.dtype == x3.dtype
    assert jnp.array_equal(y3, ref3)

    print("KERNEL_OK")
</pallas_src>

<mosaic_0001>
module attributes {stable_mosaic.version = 11 : i64} {
  func.func @_trim_kernel(%arg0: i32, %arg1: memref<2x128x128xf32, #tpu.memory_space<vmem>>, %arg2: memref<2x128x128xf32, #tpu.memory_space<vmem>>) attributes {dimension_semantics = [#tpu.dimension_semantics<parallel>], iteration_bounds = array<i64: 3>, scalar_prefetch = 0 : i64, scratch_operands = 0 : i64, tpu.core_type = #tpu.core_type<tc>, window_params = [{transform_indices = @transform_0, window_bounds = array<i64: 2, 128, 128>}, {transform_indices = @transform_1, window_bounds = array<i64: 2, 128, 128>}]} {
    %c0 = arith.constant 0 : index
    %c0_0 = arith.constant 0 : index
    %c0_1 = arith.constant 0 : index
    %0 = vector.load %arg1[%c0, %c0_0, %c0_1] : memref<2x128x128xf32, #tpu.memory_space<vmem>>, vector<2x128x128xf32>
    %c0_2 = arith.constant 0 : index
    %c0_3 = arith.constant 0 : index
    %c0_4 = arith.constant 0 : index
    %1 = vector.load %arg2[%c0_2, %c0_3, %c0_4] : memref<2x128x128xf32, #tpu.memory_space<vmem>>, vector<2x128x128xf32>
    tpu.vector_store %arg2[%c0_2, %c0_3, %c0_4], %0 {strides = array<i32>} : memref<2x128x128xf32, #tpu.memory_space<vmem>>, vector<2x128x128xf32>,
    return
  }
  func.func @transform_0(%arg0: i32) -> (i32, i32, i32) {
    %c0_i32 = arith.constant 0 : i32
    %c0_i32_0 = arith.constant 0 : i32
    %c0_i32_1 = arith.constant 0 : i32
    return %arg0, %c0_i32, %c0_i32_0 : i32, i32, i32
  }
  func.func @transform_1(%arg0: i32) -> (i32, i32, i32) {
    %c0_i32 = arith.constant 0 : i32
    %c0_i32_0 = arith.constant 0 : i32
    %c0_i32_1 = arith.constant 0 : i32
    return %arg0, %c0_i32, %c0_i32_0 : i32, i32, i32
  }
}

</mosaic_0001>

<bundles_post_ra>
// kernel: tpu_custom_call.1
= control target key start
LH: loop header
LB: loop body
LE: loop exit
PB: predicated region body
PF: predicated region fallthrough
CT: control target
= control target key end

     0   :  { %6 = vsyncpa [#allocation4], 0  ;;  %s805_s0 = inlined_call_operand.vmem [shape: f32[6,160,144], index: 0, kind: input, shape index: {}]   ;;  %s806_s1 = inlined_call_operand.hbm [shape: f32[6,128,128], index: 1, kind: output, shape index: {}]  }
   0x1   :  { %8 = vsyncpa [#allocation4 + $0x1], 0  ;;  %s560_s6 = smov 0   ;;  %s562_s7 = smov 0  }
   0x2   :  { %s564_s8 = smov 0   ;;  %s566_s9 = smov 0  }
   0x3 LB: > { %s424_s10 = sadd.s32 4294967295, %s545_s9   ;;  %s425_s11 = sadd.s32 4294967294, %s545_s9   ;;  %s545_s9 = sphi %s566_s9, %s812_s9   ;;  %s541_s8 = sphi %s564_s8, %s811_s8   ;;  %s537_s7 = sphi %s562_s7, %s810_s7   ;;  %s533_s6 = sphi %s560_s6, %s809_s6  }
   0x4   : > { %s583_s12 = sadd.s32 1, %s545_s9   ;;  %s21_s13 = sadd.s32 1, %s541_s8 }
   0x5   : > { %s18_s14 = ssub.s32 %s545_s9, %s583_s12  ;;  %p28_p0 = scmp.ne.s32.totalorder %s541_s8, %s537_s7 }
   0x6   : > { %p19_p1 = scmp.eq.s32.totalorder %s18_s14, 0  ;;  %p29_p2 = scmp.eq.s32.totalorder %s545_s9, 0 }
   0x7   : > { %p58_p3 = scmp.eq.s32.totalorder %s424_s10, 2  ;;  %p63_p4 = scmp.ne.s32.totalorder %s537_s7, %s533_s6 }
   0x8   : > { %s596_s15 = scalar_select %p19_p1, %s541_s8, %s21_s13  }
   0x9   : > { %p30_p5 = por %p29_p2, %p28_p0  ;;  %p598_p6 = por %p58_p3, %p28_p0 }
   0xa   : > { %p64_p7 = scmp.eq.s32.totalorder %s425_s11, 2  ;;  %p427_p9 = scmp.ge.s32.totalorder %s545_s9, 3 }
   0xc   : > { %p602_p8 = por %p64_p7, %p63_p4  ;;  %80 = sbr.rel (%p427_p9) target bundleno = 38 (0x26), region = 16 }
  0x11   : > { %83 = sbr.rel (!%p30_p5) target bundleno = 38 (0x26), region = 20  ;;  %s85_s18 = sand.u32 (%p30_p5), 1, %s541_s8  }
  0x12   : > { %s443_s19 = smul.u32 (%p30_p5), 640, %s545_s9  ;;  %s428_s20 = sshll.u32 (%p30_p5), %s85_s18, 8 }
  0x13   : > { %s617_s24 = scalar_lea.vmem (%p30_p5), [#allocation2], %s428_s20 }
  0x14   : > { %s612_s23 = scalar_lea.vmem (%p30_p5), %s805_s0, %s443_s19 }
  0x15   : > { %v182_v0 = vld [vmem:[%s612_s23] sm:$0xff] (%p30_p5)  ;;  %v184_v1 = vld [vmem:[%s612_s23 + $0x10] sm:$0xff] (%p30_p5) }
  0x16   : > { %v186_v2 = vld [vmem:[%s612_s23 + $0x20] sm:$0xff]  ;;  %183 = vst [vmem:[%s617_s24] sm:$0xff] %v182_v0  ;;  %185 = vst [vmem:[%s617_s24 + $0x8] sm:$0xff] %v184_v1  ;;  %v188_v3 = vld [vmem:[%s612_s23 + $0x30] sm:$0xff] }
  0x17   : > { %187 = vst [vmem:[%s617_s24 + $0x10] sm:$0xff] %v186_v2  ;;  %v190_v4 = vld [vmem:[%s612_s23 + $0x40] sm:$0xff]  ;;  %v192_v5 = vld [vmem:[%s612_s23 + $0x50] sm:$0xff]  ;;  %189 = vst [vmem:[%s617_s24 + $0x18] sm:$0xff] %v188_v3 }
  0x18   : > { %191 = vst [vmem:[%s617_s24 + $0x20] sm:$0xff] %v190_v4  ;;  %193 = vst [vmem:[%s617_s24 + $0x28] sm:$0xff] %v192_v5  ;;  %v194_v6 = vld [vmem:[%s612_s23 + $0x60] sm:$0xff]  ;;  %v196_v7 = vld [vmem:[%s612_s23 + $0x70] sm:$0xff] }
  0x19   : > { %v198_v8 = vld [vmem:[%s612_s23 + $0x80] sm:$0xff]  ;;  %195 = vst [vmem:[%s617_s24 + $0x30] sm:$0xff] %v194_v6  ;;  %197 = vst [vmem:[%s617_s24 + $0x38] sm:$0xff] %v196_v7  ;;  %v200_v9 = vld [vmem:[%s612_s23 + $0x90] sm:$0xff] }
  0x1a   : > { %199 = vst [vmem:[%s617_s24 + $0x40] sm:$0xff] %v198_v8  ;;  %v202_v10 = vld [vmem:[%s612_s23 + $0xa0] sm:$0xff]  ;;  %v204_v11 = vld [vmem:[%s612_s23 + $0xb0] sm:$0xff]  ;;  %201 = vst [vmem:[%s617_s24 + $0x48] sm:$0xff] %v200_v9 }
  0x1b   : > { %203 = vst [vmem:[%s617_s24 + $0x50] sm:$0xff] %v202_v10  ;;  %205 = vst [vmem:[%s617_s24 + $0x58] sm:$0xff] %v204_v11  ;;  %v206_v12 = vld [vmem:[%s612_s23 + $0xc0] sm:$0xff]  ;;  %v208_v13 = vld [vmem:[%s612_s23 + $0xd0] sm:$0xff] }
  0x1c   : > { %v210_v14 = vld [vmem:[%s612_s23 + $0xe0] sm:$0xff]  ;;  %207 = vst [vmem:[%s617_s24 + $0x60] sm:$0xff] %v206_v12  ;;  %209 = vst [vmem:[%s617_s24 + $0x68] sm:$0xff] %v208_v13  ;;  %v212_v15 = vld [vmem:[%s612_s23 + $0xf0] sm:$0xff] }
  0x1d   : > { %211 = vst [vmem:[%s617_s24 + $0x70] sm:$0xff] %v210_v14  ;;  %v214_v16 = vld [vmem:[%s612_s23 + $0x140] sm:$0xff]  ;;  %v216_v17 = vld [vmem:[%s612_s23 + $0x150] sm:$0xff]  ;;  %213 = vst [vmem:[%s617_s24 + $0x78] sm:$0xff] %v212_v15 }
  0x1e   : > { %215 = vst [vmem:[%s617_s24 + $0x80] sm:$0xff] %v214_v16  ;;  %217 = vst [vmem:[%s617_s24 + $0x88] sm:$0xff] %v216_v17  ;;  %v218_v18 = vld [vmem:[%s612_s23 + $0x160] sm:$0xff]  ;;  %v220_v19 = vld [vmem:[%s612_s23 + $0x170] sm:$0xff] }
  0x1f   : > { %v222_v20 = vld [vmem:[%s612_s23 + $0x180] sm:$0xff]  ;;  %219 = vst [vmem:[%s617_s24 + $0x90] sm:$0xff] %v218_v18  ;;  %221 = vst [vmem:[%s617_s24 + $0x98] sm:$0xff] %v220_v19  ;;  %v224_v21 = vld [vmem:[%s612_s23 + $0x190] sm:$0xff] }
  0x20   : > { %223 = vst [vmem:[%s617_s24 + $0xa0] sm:$0xff] %v222_v20  ;;  %v226_v22 = vld [vmem:[%s612_s23 + $0x1a0] sm:$0xff]  ;;  %v228_v23 = vld [vmem:[%s612_s23 + $0x1b0] sm:$0xff]  ;;  %225 = vst [vmem:[%s617_s24 + $0xa8] sm:$0xff] %v224_v21 }
  0x21   : > { %227 = vst [vmem:[%s617_s24 + $0xb0] sm:$0xff] %v226_v22  ;;  %229 = vst [vmem:[%s617_s24 + $0xb8] sm:$0xff] %v228_v23  ;;  %v230_v24 = vld [vmem:[%s612_s23 + $0x1c0] sm:$0xff]  ;;  %v232_v25 = vld [vmem:[%s612_s23 + $0x1d0] sm:$0xff] }
  0x22   : > { %v234_v26 = vld [vmem:[%s612_s23 + $0x1e0] sm:$0xff]  ;;  %231 = vst [vmem:[%s617_s24 + $0xc0] sm:$0xff] %v230_v24  ;;  %233 = vst [vmem:[%s617_s24 + $0xc8] sm:$0xff] %v232_v25  ;;  %v236_v27 = vld [vmem:[%s612_s23 + $0x1f0] sm:$0xff] }
  0x23   : > { %235 = vst [vmem:[%s617_s24 + $0xd0] sm:$0xff] %v234_v26  ;;  %v238_v28 = vld [vmem:[%s612_s23 + $0x200] sm:$0xff]  ;;  %v240_v29 = vld [vmem:[%s612_s23 + $0x210] sm:$0xff]  ;;  %237 = vst [vmem:[%s617_s24 + $0xd8] sm:$0xff] %v236_v27 }
  0x24   : > { %239 = vst [vmem:[%s617_s24 + $0xe0] sm:$0xff] %v238_v28  ;;  %241 = vst [vmem:[%s617_s24 + $0xe8] sm:$0xff] %v240_v29  ;;  %v242_v30 = vld [vmem:[%s612_s23 + $0x220] sm:$0xff]  ;;  %v244_v31 = vld [vmem:[%s612_s23 + $0x230] sm:$0xff] }
  0x25   : > { %243 = vst [vmem:[%s617_s24 + $0xf0] sm:$0xff] %v242_v30  ;;  %245 = vst [vmem:[%s617_s24 + $0xf8] sm:$0xff] %v244_v31 }
  0x26 PF: > { %p432_p10 = scmp.ge.s32.totalorder %s545_s9, 1  ;;  %p250_p11 = scmp.lt.s32.totalorder %s545_s9, 4 }
  0x28   : > { %p251_p12 = pnand %p432_p10, %p250_p11 }
  0x29   : > { %s257_s25 = sand.u32 (!%p251_p12), 1, %s537_s7   ;;  %s442_s29 = sshll.u32 (!%p251_p12), %s424_s10, 12 }
  0x2a   : > { %254 = sbr.rel (%p251_p12) target bundleno = 77 (0x4d), region = 58  ;;  %s433_s26 = sshll.u32 (!%p251_p12), %s257_s25, 8 }
  0x2b   : > { %s685_s27 = scalar_lea.vmem (!%p251_p12), [#allocation2], %s433_s26  ;;  %s690_s28 = scalar_lea.vmem (!%p251_p12), [#allocation3], %s433_s26 }
  0x2c   : > { %s357_s30 = sshll.u32 (!%p251_p12), %s690_s28, 4  ;;  %s746_s4 = scalar_lea.hbm (!%p251_p12), %s806_s1, %s442_s29  ;;  %s748_s30 = int_to_ptr.vmem [resolvable:$true] %s357_s30 }
  0x2d   : > { %s765_s5 = scalar_lea.sflag (!%p251_p12), [#allocation4], %s257_s25  ;;  %s485_s10 = scalar_lea.vmem (!%p251_p12), %s748_s30, 4096 }
  0x2e   : > { %p486_p13 = scmp.ne.s32.totalorder (!%p251_p12), %s748_s30, %s485_s10  ;;  %s547_s11 = smov (!%p251_p12), [#allocation3]  }
  0x2f   : > { %v278_v32 = vld [vmem:[%s685_s27] sm:$0xff]  ;;  %v279_v33 = vld [vmem:[%s685_s27 + $0x8] sm:$0xff]  ;;  %v280_v34 = vld [vmem:[%s685_s27 + $0x10] sm:$0xff]  ;;  %s489_s13 = sshll.u32 %s547_s11, 4  ;;  %s490_s13 = int_to_ptr.vmem [resolvable:$false] %s489_s13 }
  0x30   : > { %310 = vst [vmem:[%s690_s28] sm:$0xff] %v278_v32  ;;  %311 = vst [vmem:[%s690_s28 + $0x8] sm:$0xff] %v279_v33  ;;  %v281_v35 = vld [vmem:[%s685_s27 + $0x18] sm:$0xff]  ;;  %v282_v36 = vld [vmem:[%s685_s27 + $0x20] sm:$0xff]  ;;  %p487_p0 = pnand %p486_p13, %p598_p6  ;;  %s491_s14 = scalar_lea.vmem %s490_s13, 8192 }
  0x31   : > { %312 = vst [vmem:[%s690_s28 + $0x10] sm:$0xff] %v280_v34  ;;  %v283_v37 = vld [vmem:[%s685_s27 + $0x28] sm:$0xff]  ;;  %313 = vst [vmem:[%s690_s28 + $0x18] sm:$0xff] %v281_v35  ;;  %v284_v38 = vld [vmem:[%s685_s27 + $0x30] sm:$0xff]  ;;  %p492_p2 = scmp.lt.s32.totalorder %s748_s30, %s490_s13  ;;  %p493_p3 = scmp.lt.s32.totalorder %s491_s14, %s485_s10 }
  0x32   : > { %314 = vst [vmem:[%s690_s28 + $0x20] sm:$0xff] %v282_v36  ;;  %315 = vst [vmem:[%s690_s28 + $0x28] sm:$0xff] %v283_v37  ;;  %v285_v39 = vld [vmem:[%s685_s27 + $0x38] sm:$0xff]  ;;  %v286_v40 = vld [vmem:[%s685_s27 + $0x40] sm:$0xff]  ;;  %p488_p1 = pneg %p487_p0 }
  0x33   : > { %316 = vst [vmem:[%s690_s28 + $0x30] sm:$0xff] %v284_v38  ;;  %317 = vst [vmem:[%s690_s28 + $0x38] sm:$0xff] %v285_v39  ;;  %v287_v41 = vld [vmem:[%s685_s27 + $0x48] sm:$0xff]  ;;  %v288_v42 = vld [vmem:[%s685_s27 + $0x50] sm:$0xff]  ;;  %p494_p4 = por %p493_p3, %p492_p2 }
  0x34   : > { %318 = vst [vmem:[%s690_s28 + $0x40] sm:$0xff] %v286_v40  ;;  %v289_v43 = vld [vmem:[%s685_s27 + $0x58] sm:$0xff]  ;;  %319 = vst [vmem:[%s690_s28 + $0x48] sm:$0xff] %v287_v41  ;;  %v290_v44 = vld [vmem:[%s685_s27 + $0x60] sm:$0xff] }
  0x35   : > { %320 = vst [vmem:[%s690_s28 + $0x50] sm:$0xff] %v288_v42  ;;  %321 = vst [vmem:[%s690_s28 + $0x58] sm:$0xff] %v289_v43  ;;  %v291_v45 = vld [vmem:[%s685_s27 + $0x68] sm:$0xff]  ;;  %v292_v46 = vld [vmem:[%s685_s27 + $0x70] sm:$0xff]  ;;  %p495_p5 = pnand %p494_p4, %p488_p1 }
  0x36   : > { %322 = vst [vmem:[%s690_s28 + $0x60] sm:$0xff] %v290_v44  ;;  %323 = vst [vmem:[%s690_s28 + $0x68] sm:$0xff] %v291_v45  ;;  %v293_v47 = vld [vmem:[%s685_s27 + $0x78] sm:$0xff]  ;;  %v294_v48 = vld [vmem:[%s685_s27 + $0x80] sm:$0xff] }
  0x37   : > { %324 = vst [vmem:[%s690_s28 + $0x70] sm:$0xff] %v292_v46  ;;  %v295_v49 = vld [vmem:[%s685_s27 + $0x88] sm:$0xff]  ;;  %325 = vst [vmem:[%s690_s28 + $0x78] sm:$0xff] %v293_v47  ;;  %v296_v50 = vld [vmem:[%s685_s27 + $0x90] sm:$0xff] }
  0x38   : > { %326 = vst [vmem:[%s690_s28 + $0x80] sm:$0xff] %v294_v48  ;;  %327 = vst [vmem:[%s690_s28 + $0x88] sm:$0xff] %v295_v49  ;;  %v297_v51 = vld [vmem:[%s685_s27 + $0x98] sm:$0xff]  ;;  %v298_v52 = vld [vmem:[%s685_s27 + $0xa0] sm:$0xff] }
  0x39   : > { %328 = vst [vmem:[%s690_s28 + $0x90] sm:$0xff] %v296_v50  ;;  %329 = vst [vmem:[%s690_s28 + $0x98] sm:$0xff] %v297_v51  ;;  %v299_v53 = vld [vmem:[%s685_s27 + $0xa8] sm:$0xff]  ;;  %v300_v54 = vld [vmem:[%s685_s27 + $0xb0] sm:$0xff] }
  0x3a   : > { %330 = vst [vmem:[%s690_s28 + $0xa0] sm:$0xff] %v298_v52  ;;  %v301_v55 = vld [vmem:[%s685_s27 + $0xb8] sm:$0xff]  ;;  %331 = vst [vmem:[%s690_s28 + $0xa8] sm:$0xff] %v299_v53  ;;  %v302_v56 = vld [vmem:[%s685_s27 + $0xc0] sm:$0xff] }
  0x3b   : > { %332 = vst [vmem:[%s690_s28 + $0xb0] sm:$0xff] %v300_v54  ;;  %333 = vst [vmem:[%s690_s28 + $0xb8] sm:$0xff] %v301_v55  ;;  %v303_v57 = vld [vmem:[%s685_s27 + $0xc8] sm:$0xff]  ;;  %v304_v58 = vld [vmem:[%s685_s27 + $0xd0] sm:$0xff] }
  0x3c   : > { %334 = vst [vmem:[%s690_s28 + $0xc0] sm:$0xff] %v302_v56  ;;  %335 = vst [vmem:[%s690_s28 + $0xc8] sm:$0xff] %v303_v57  ;;  %v305_v59 = vld [vmem:[%s685_s27 + $0xd8] sm:$0xff]  ;;  %v306_v60 = vld [vmem:[%s685_s27 + $0xe0] sm:$0xff] }
  0x3d   : > { %336 = vst [vmem:[%s690_s28 + $0xd0] sm:$0xff] %v304_v58  ;;  %v307_v61 = vld [vmem:[%s685_s27 + $0xe8] sm:$0xff]  ;;  %337 = vst [vmem:[%s690_s28 + $0xd8] sm:$0xff] %v305_v59  ;;  %v308_v62 = vld [vmem:[%s685_s27 + $0xf0] sm:$0xff] }
  0x3e   : > { %338 = vst [vmem:[%s690_s28 + $0xe0] sm:$0xff] %v306_v60  ;;  %339 = vst [vmem:[%s690_s28 + $0xe8] sm:$0xff] %v307_v61  ;;  %v309_v63 = vld [vmem:[%s685_s27 + $0xf8] sm:$0xff] }
  0x3f   : > { %340 = vst [vmem:[%s690_s28 + $0xf0] sm:$0xff] %v308_v62  ;;  %341 = vst [vmem:[%s690_s28 + $0xf8] sm:$0xff] %v309_v63 }
  0x40   : > { %498 = shalt.err (!%p495_p5)
}
  0x41   : > { %s499_s18 = scalar_lea.hbm %s746_s4, 4096  ;;  %s503_s21 = scalar_lea.hbm %s806_s1, 12288 }
  0x42   : > { %p500_p7 = scmp.ne.s32.totalorder %s746_s4, %s499_s18  ;;  %p504_p11 = scmp.lt.s32.totalorder %s746_s4, %s806_s1 }
  0x43   : > { %p505_p12 = scmp.lt.s32.totalorder %s503_s21, %s499_s18 }
  0x44   : > { %p501_p9 = pnand %p500_p7, %p598_p6 }
  0x45   : > { %p506_p13 = por %p505_p12, %p504_p11 }
  0x46   : > { %p502_p10 = pneg %p501_p9 }
  0x48   : > { %p507_p0 = pnand %p506_p13, %p502_p10 }
  0x4a   : > { %510 = shalt.err (!%p507_p0)
}
  0x4b   : > { %s548_s24 = smov 128   ;;  %s549_s25 = smov 8  }
  0x4c   : > { %444 = dma.vmem_to_hbm [thread:$0]  (%p598_p6), %s748_s30, 4096, %s746_s4, %s765_s5, %s548_s24, %s548_s24, %s549_s25  }
  0x4d PF: > { %p450_p1 = scmp.ge.s32.totalorder %s545_s9, 2  ;;  %s372_s26 = sand.u32 1, %s533_s6  }
  0x4e   : > { %s373_s27 = scalar_lea.sflag [#allocation4], %s372_s26 }
  0x4f   : > { %p447_p2 = pnand %p450_p1, %p602_p8 }
  0x51   : > { %p448_p3 = pneg %p447_p2 }
  0x53   : > { %528 = dma.done.wait (%p448_p3), %s373_s27, 4096  }
  0x54   : > { %530 = vsyncadd (%p448_p3), %s373_s27, 4294963200  ;;  %p11_p4 = scmp.ge.s32.totalorder %s583_s12, 5   ;;  %s809_s6 = smov %s537_s7 }
  0x55   : > { %s810_s7 = smov %s541_s8  ;;  %s811_s8 = smov %s596_s15 }
  0x56   : > { %s812_s9 = smov %s583_s12  ;;  %13 = sbr.rel (!%p11_p4) target bundleno = 3 (0x3), region = 102 }
  0x5b   :  { %378 = vsyncpa [#allocation4], 1 }
  0x5c   :  { %380 = vsyncpa [#allocation4 + $0x1], 1 }

</bundles_post_ra>
